<compile_context>
chip_gen: v7x
topology: tpu7x:2x2x1
jax: 0.10.0
libtpu: 0.0.40
codegen_flags: <defaults>
</compile_context>

<pallas_src>
import functools

import numpy as np
import jax
import jax.numpy as jnp
from jax import lax
from jax.experimental import pallas as pl
from jax.experimental.pallas import tpu as pltpu


_VMEM_LIMIT_BYTES = 48 * 1024 * 1024   # > scoped defaults, < v7x 64 MiB physical
_VMEM_TILE_BUDGET = 30 * 1024 * 1024   # budget for the streamed/temporary rows


def _choose_row_tile(n_rows, row_bytes):
    """Largest row tile that divides n_rows, is a multiple of 8 and fits budget."""
    max_rows = max(8, _VMEM_TILE_BUDGET // max(1, row_bytes))
    for tm in (1024, 512, 256, 128, 64, 32, 16, 8):
        if tm <= n_rows and tm <= max_rows and n_rows % tm == 0:
            return tm
    # Odd / tiny N: fall back to a single full block.  For extremely large N
    # with an awkward row count, the Laplacian K dimension would also need
    # tiling; not required for the shapes this module targets.
    return n_rows


# ----------------------------------------------------------------------------
# Kernel 1/2: out_tile = (relu)(lap_tile @ rhs_full)
# ----------------------------------------------------------------------------
def _lap_matmul_kernel(lap_ref, rhs_ref, out_ref, *, apply_relu):
    acc = jnp.dot(lap_ref[...], rhs_ref[...], preferred_element_type=jnp.float32)
    if apply_relu:
        acc = jnp.maximum(acc, 0.0)
    out_ref[...] = acc.astype(out_ref.dtype)


def _lap_matmul(lap, rhs, *, apply_relu):
    n = lap.shape[0]
    d = rhs.shape[1]
    # Dominant per-row VMEM traffic: double-buffered f32 Laplacian rows.
    tm = _choose_row_tile(n, row_bytes=2 * 4 * n)
    grid = (pl.cdiv(n, tm),)
    cost = pl.CostEstimate(
        flops=2 * n * n * d,
        transcendentals=0,
        bytes_accessed=4 * (n * n + 2 * n * d),
    )
    return pl.pallas_call(
        functools.partial(_lap_matmul_kernel, apply_relu=apply_relu),
        out_shape=jax.ShapeDtypeStruct((n, d), jnp.float32),
        grid_spec=pltpu.PrefetchScalarGridSpec(
            num_scalar_prefetch=0,
            grid=grid,
            in_specs=[
                pl.BlockSpec((tm, n), lambda i: (i, 0)),  # streamed Laplacian rows
                pl.BlockSpec((n, d), lambda i: (0, 0)),   # small rhs, resident
            ],
            out_specs=pl.BlockSpec((tm, d), lambda i: (i, 0)),
        ),
        compiler_params=pltpu.CompilerParams(
            dimension_semantics=("parallel",),
            vmem_limit_bytes=_VMEM_LIMIT_BYTES,
        ),
        cost_estimate=cost,
    )(lap, rhs)


# ----------------------------------------------------------------------------
# Kernel 3: recons_tile = softmax(-pairwise_sq_dist)(row tile) + 1e-10
# ----------------------------------------------------------------------------
def _recons_kernel(z_tile_ref, z_full_ref, sq_ref, rec_ref):
    z_t = z_tile_ref[...]                     # (TM, D2)
    z_f = z_full_ref[...]                     # (N,  D2)
    # Gram tile on the MXU without materializing z.T (NT contraction).
    cross = lax.dot_general(
        z_t, z_f,
        dimension_numbers=(((1,), (1,)), ((), ())),
        preferred_element_type=jnp.float32,
    )                                          # (TM, N)
    # softmax(-dist) with dist_ij = ||z_i||^2 + ||z_j||^2 - 2 z_i.z_j.
    # The per-row ||z_i||^2 shift cancels inside the softmax, so the logits are
    # just 2*cross - ||z_j||^2 (row-broadcast only; no clamp / negate / sq.T).
    logits = 2.0 * cross - sq_ref[...]         # sq_ref: (1, N)
    m = jnp.max(logits, axis=1, keepdims=True)
    e = jnp.exp(logits - m)
    denom = jnp.sum(e, axis=1, keepdims=True)
    rec = e * pl.reciprocal(denom, approx=True) + 1e-10
    rec_ref[...] = rec.astype(rec_ref.dtype)


def _recons_softmax(z, sq_rows):
    n, d = z.shape
    # Per-row VMEM traffic: double-buffered output rows + ~3-4 live f32 temps.
    tm = _choose_row_tile(n, row_bytes=6 * 4 * n)
    grid = (pl.cdiv(n, tm),)
    cost = pl.CostEstimate(
        flops=2 * n * n * d + 5 * n * n,
        transcendentals=n * n,
        bytes_accessed=4 * (2 * n * d + n + n * n),
    )
    return pl.pallas_call(
        _recons_kernel,
        out_shape=jax.ShapeDtypeStruct((n, n), jnp.float32),
        grid_spec=pltpu.PrefetchScalarGridSpec(
            num_scalar_prefetch=0,
            grid=grid,
            in_specs=[
                pl.BlockSpec((tm, d), lambda i: (i, 0)),  # z row tile
                pl.BlockSpec((n, d), lambda i: (0, 0)),   # z resident (columns)
                pl.BlockSpec((1, n), lambda i: (0, 0)),   # ||z_j||^2 row, resident
            ],
            # Lane-dense output (last dim = N) -> unmasked vst writeback.
            out_specs=pl.BlockSpec((tm, n), lambda i: (i, 0)),
        ),
        compiler_params=pltpu.CompilerParams(
            dimension_semantics=("parallel",),
            vmem_limit_bytes=_VMEM_LIMIT_BYTES,
        ),
        cost_estimate=cost,
    )(z, z, sq_rows)


# ----------------------------------------------------------------------------
# Forward wrapper
# ----------------------------------------------------------------------------
@jax.jit
def adagae_forward(xi, laplacian, w1, w2):
    n, d0 = xi.shape
    d1 = w1.shape[1]
    d2 = w2.shape[1]
    assert laplacian.shape == (n, n)
    assert w1.shape == (d0, d1) and w2.shape == (d1, d2)

    # Tiny O(N*D^2) projections stay in plain XLA (negligible vs the N^2 work,
    # and keeps the (xi @ w1) association identical to the reference module).
    xw = jnp.dot(xi, w1)                                   # (N, D1)
    h = _lap_matmul(laplacian, xw, apply_relu=True)        # (N, D1)
    hw = jnp.dot(h, w2)                                    # (N, D2)
    z = _lap_matmul(laplacian, hw, apply_relu=False)       # (N, D2) == embedding
    sq_rows = jnp.sum(z * z, axis=1)[None, :]              # (1, N) = ||z_j||^2
    recons_w = _recons_softmax(z, sq_rows)                 # (N, N)
    return z, recons_w


# ----------------------------------------------------------------------------
# Test harness
# ----------------------------------------------------------------------------
def _glorot_uniform(key, shape):
    # Matches AdaGAE.get_weight_initial: U(-b, b), b = sqrt(6/(fan_in+fan_out))
    bound = np.sqrt(6.0 / (shape[0] + shape[1]))
    return jax.random.uniform(
        key, shape, dtype=jnp.float32, minval=-bound, maxval=bound
    )


def _reference_forward(xi, lap, w1, w2):
    h = jnp.maximum(lap @ (xi @ w1), 0.0)
    z = lap @ (h @ w2)
    sq = jnp.sum(z * z, axis=1, keepdims=True)
    dist = jnp.maximum(sq + sq.T - 2.0 * (z @ z.T), 0.0)
    rec = jax.nn.softmax(-dist, axis=1) + 1e-10
    return z, rec


if __name__ == "__main__":
    # Small shapes consistent with AdaGAE(layer_dims=[64, 32, 16]) on 128 nodes.
    N, D0, D1, D2 = 128, 64, 32, 16

    key = jax.random.PRNGKey(0)
    k_x, k_a, k_w1, k_w2 = jax.random.split(key, 4)

    xi = jax.random.normal(k_x, (N, D0), dtype=jnp.float32)

    # Deterministic synthetic (normalized-adjacency-style) Laplacian input.
    a = jax.random.uniform(k_a, (N, N), dtype=jnp.float32)
    a = 0.5 * (a + a.T) + jnp.eye(N, dtype=jnp.float32)
    deg = jnp.sum(a, axis=1)
    d_inv_sqrt = 1.0 / jnp.sqrt(deg)
    laplacian = a * d_inv_sqrt[:, None] * d_inv_sqrt[None, :]

    # AdaGAE parameters (z_pass_linear=False; those linears are unused in forward).
    w1 = _glorot_uniform(k_w1, (D0, D1))
    w2 = _glorot_uniform(k_w2, (D1, D2))

    embedding, recons_w = adagae_forward(xi, laplacian, w1, w2)
    jax.block_until_ready((embedding, recons_w))

    emb_ref, rec_ref = _reference_forward(xi, laplacian, w1, w2)
    assert embedding.shape == (N, D2) and recons_w.shape == (N, N)
    np.testing.assert_allclose(np.asarray(embedding), np.asarray(emb_ref),
                               rtol=1e-5, atol=1e-5)
    # Looser rtol on recons_w: approx (EUP) reciprocal in the softmax
    # normalization and the shift-invariant logits perturb values at ~1e-4.
    np.testing.assert_allclose(np.asarray(recons_w), np.asarray(rec_ref),
                               rtol=2e-3, atol=1e-6)

    print("KERNEL_OK")
</pallas_src>

<mosaic_0001>
module attributes {stable_mosaic.version = 11 : i64} {
  func.func @_lap_matmul_kernel(%arg0: i32, %arg1: memref<128x128xf32, #tpu.memory_space<vmem>>, %arg2: memref<128x16xf32, #tpu.memory_space<vmem>>, %arg3: memref<128x16xf32, #tpu.memory_space<vmem>>) attributes {dimension_semantics = [#tpu.dimension_semantics<parallel>], iteration_bounds = array<i64: 1>, scalar_prefetch = 0 : i64, scratch_operands = 0 : i64, tpu.core_type = #tpu.core_type<tc>, window_params = [{transform_indices = @transform_0, window_bounds = array<i64: 128, 128>}, {pipeline_mode = #tpu.pipeline_mode<synchronous>, transform_indices = @transform_1, window_bounds = array<i64: 128, 16>}, {transform_indices = @transform_2, window_bounds = array<i64: 128, 16>}]} {
    %c0 = arith.constant 0 : index
    %c0_0 = arith.constant 0 : index
    %0 = vector.load %arg1[%c0, %c0_0] : memref<128x128xf32, #tpu.memory_space<vmem>>, vector<128x128xf32>
    %c0_1 = arith.constant 0 : index
    %c0_2 = arith.constant 0 : index
    %1 = vector.load %arg2[%c0_1, %c0_2] : memref<128x16xf32, #tpu.memory_space<vmem>>, vector<128x16xf32>
    %cst = arith.constant dense<0.000000e+00> : vector<128x16xf32>
    %2 = tpu.matmul %0, %1, %cst {dimension_numbers = #tpu.dot_dimension_numbers<[1], [0], [0], [1], [0, 0, 1, 1], [], []>} : vector<128x128xf32>, vector<128x16xf32>, vector<128x16xf32> -> vector<128x16xf32>
    %c0_3 = arith.constant 0 : index
    %c0_4 = arith.constant 0 : index
    %3 = vector.load %arg3[%c0_3, %c0_4] : memref<128x16xf32, #tpu.memory_space<vmem>>, vector<128x16xf32>
    tpu.vector_store %arg3[%c0_3, %c0_4], %2 {strides = array<i32>} : memref<128x16xf32, #tpu.memory_space<vmem>>, vector<128x16xf32>,
    return
  }
  func.func @transform_0(%arg0: i32) -> (i32, i32) {
    %c0_i32 = arith.constant 0 : i32
    %c0_i32_0 = arith.constant 0 : i32
    return %arg0, %c0_i32 : i32, i32
  }
  func.func @transform_1(%arg0: i32) -> (i32, i32) {
    %c0_i32 = arith.constant 0 : i32
    %c0_i32_0 = arith.constant 0 : i32
    %c0_i32_1 = arith.constant 0 : i32
    return %c0_i32, %c0_i32_0 : i32, i32
  }
  func.func @transform_2(%arg0: i32) -> (i32, i32) {
    %c0_i32 = arith.constant 0 : i32
    %c0_i32_0 = arith.constant 0 : i32
    return %arg0, %c0_i32 : i32, i32
  }
}

module attributes {stable_mosaic.version = 11 : i64} {
  func.func @_lap_matmul_kernel(%arg0: i32, %arg1: memref<128x128xf32, #tpu.memory_space<vmem>>, %arg2: memref<128x32xf32, #tpu.memory_space<vmem>>, %arg3: memref<128x32xf32, #tpu.memory_space<vmem>>) attributes {dimension_semantics = [#tpu.dimension_semantics<parallel>], iteration_bounds = array<i64: 1>, scalar_prefetch = 0 : i64, scratch_operands = 0 : i64, tpu.core_type = #tpu.core_type<tc>, window_params = [{transform_indices = @transform_0, window_bounds = array<i64: 128, 128>}, {pipeline_mode = #tpu.pipeline_mode<synchronous>, transform_indices = @transform_1, window_bounds = array<i64: 128, 32>}, {transform_indices = @transform_2, window_bounds = array<i64: 128, 32>}]} {
    %c0 = arith.constant 0 : index
    %c0_0 = arith.constant 0 : index
    %0 = vector.load %arg1[%c0, %c0_0] : memref<128x128xf32, #tpu.memory_space<vmem>>, vector<128x128xf32>
    %c0_1 = arith.constant 0 : index
    %c0_2 = arith.constant 0 : index
    %1 = vector.load %arg2[%c0_1, %c0_2] : memref<128x32xf32, #tpu.memory_space<vmem>>, vector<128x32xf32>
    %cst = arith.constant dense<0.000000e+00> : vector<128x32xf32>
    %2 = tpu.matmul %0, %1, %cst {dimension_numbers = #tpu.dot_dimension_numbers<[1], [0], [0], [1], [0, 0, 1, 1], [], []>} : vector<128x128xf32>, vector<128x32xf32>, vector<128x32xf32> -> vector<128x32xf32>
    %cst_3 = arith.constant 0.000000e+00 : f32
    %3 = vector.broadcast %cst_3 : f32 to vector<128x32xf32>
    %4 = arith.maximumf %2, %3 : vector<128x32xf32>
    %c0_4 = arith.constant 0 : index
    %c0_5 = arith.constant 0 : index
    %5 = vector.load %arg3[%c0_4, %c0_5] : memref<128x32xf32, #tpu.memory_space<vmem>>, vector<128x32xf32>
    tpu.vector_store %arg3[%c0_4, %c0_5], %4 {strides = array<i32>} : memref<128x32xf32, #tpu.memory_space<vmem>>, vector<128x32xf32>,
    return
  }
  func.func @transform_0(%arg0: i32) -> (i32, i32) {
    %c0_i32 = arith.constant 0 : i32
    %c0_i32_0 = arith.constant 0 : i32
    return %arg0, %c0_i32 : i32, i32
  }
  func.func @transform_1(%arg0: i32) -> (i32, i32) {
    %c0_i32 = arith.constant 0 : i32
    %c0_i32_0 = arith.constant 0 : i32
    %c0_i32_1 = arith.constant 0 : i32
    return %c0_i32, %c0_i32_0 : i32, i32
  }
  func.func @transform_2(%arg0: i32) -> (i32, i32) {
    %c0_i32 = arith.constant 0 : i32
    %c0_i32_0 = arith.constant 0 : i32
    return %arg0, %c0_i32 : i32, i32
  }
}

module attributes {stable_mosaic.version = 11 : i64} {
  func.func @_recons_kernel(%arg0: i32, %arg1: memref<128x16xf32, #tpu.memory_space<vmem>>, %arg2: memref<128x16xf32, #tpu.memory_space<vmem>>, %arg3: memref<1x128xf32, #tpu.memory_space<vmem>>, %arg4: memref<128x128xf32, #tpu.memory_space<vmem>>) attributes {dimension_semantics = [#tpu.dimension_semantics<parallel>], iteration_bounds = array<i64: 1>, scalar_prefetch = 0 : i64, scratch_operands = 0 : i64, tpu.core_type = #tpu.core_type<tc>, window_params = [{transform_indices = @transform_0, window_bounds = array<i64: 128, 16>}, {pipeline_mode = #tpu.pipeline_mode<synchronous>, transform_indices = @transform_1, window_bounds = array<i64: 128, 16>}, {pipeline_mode = #tpu.pipeline_mode<synchronous>, transform_indices = @transform_2, window_bounds = array<i64: 1, 128>}, {transform_indices = @transform_3, window_bounds = array<i64: 128, 128>}]} {
    %c0 = arith.constant 0 : index
    %c0_0 = arith.constant 0 : index
    %0 = vector.load %arg1[%c0, %c0_0] : memref<128x16xf32, #tpu.memory_space<vmem>>, vector<128x16xf32>
    %c0_1 = arith.constant 0 : index
    %c0_2 = arith.constant 0 : index
    %1 = vector.load %arg2[%c0_1, %c0_2] : memref<128x16xf32, #tpu.memory_space<vmem>>, vector<128x16xf32>
    %cst = arith.constant dense<0.000000e+00> : vector<128x128xf32>
    %2 = tpu.matmul %0, %1, %cst {dimension_numbers = #tpu.dot_dimension_numbers<[1], [1], [0], [0], [0, 0, 1, 0], [], []>} : vector<128x16xf32>, vector<128x16xf32>, vector<128x128xf32> -> vector<128x128xf32>
    %cst_3 = arith.constant 2.000000e+00 : f32
    %3 = vector.broadcast %cst_3 : f32 to vector<128x128xf32>
    %4 = arith.mulf %3, %2 : vector<128x128xf32>
    %c0_4 = arith.constant 0 : index
    %c0_5 = arith.constant 0 : index
    %5 = vector.load %arg3[%c0_4, %c0_5] : memref<1x128xf32, #tpu.memory_space<vmem>>, vector<1x128xf32>
    %6 = vector.broadcast %5 : vector<1x128xf32> to vector<128x128xf32>
    %7 = arith.subf %4, %6 : vector<128x128xf32>
    %cst_6 = arith.constant dense<0xFF800000> : vector<128xf32>
    %8 = vector.multi_reduction <maximumf>, %7, %cst_6 [1] : vector<128x128xf32> to vector<128xf32>
    %9 = vector.shape_cast %8 : vector<128xf32> to vector<128x1xf32>
    %10 = vector.broadcast %9 : vector<128x1xf32> to vector<128x128xf32>
    %11 = arith.subf %7, %10 : vector<128x128xf32>
    %12 = math.exp %11 : vector<128x128xf32>
    %cst_7 = arith.constant dense<0.000000e+00> : vector<128xf32>
    %13 = vector.multi_reduction <add>, %12, %cst_7 [1] : vector<128x128xf32> to vector<128xf32>
    %14 = vector.shape_cast %13 : vector<128xf32> to vector<128x1xf32>
    %15 = tpu.reciprocal %14 {approx = true} : vector<128x1xf32> -> vector<128x1xf32>
    %16 = vector.broadcast %15 : vector<128x1xf32> to vector<128x128xf32>
    %17 = arith.mulf %12, %16 : vector<128x128xf32>
    %cst_8 = arith.constant 1.000000e-10 : f32
    %18 = vector.broadcast %cst_8 : f32 to vector<128x128xf32>
    %19 = arith.addf %17, %18 : vector<128x128xf32>
    %c0_9 = arith.constant 0 : index
    %c0_10 = arith.constant 0 : index
    %20 = vector.load %arg4[%c0_9, %c0_10] : memref<128x128xf32, #tpu.memory_space<vmem>>, vector<128x128xf32>
    tpu.vector_store %arg4[%c0_9, %c0_10], %19 {strides = array<i32>} : memref<128x128xf32, #tpu.memory_space<vmem>>, vector<128x128xf32>,
    return
  }
  func.func @transform_0(%arg0: i32) -> (i32, i32) {
    %c0_i32 = arith.constant 0 : i32
    %c0_i32_0 = arith.constant 0 : i32
    return %arg0, %c0_i32 : i32, i32
  }
  func.func @transform_1(%arg0: i32) -> (i32, i32) {
    %c0_i32 = arith.constant 0 : i32
    %c0_i32_0 = arith.constant 0 : i32
    %c0_i32_1 = arith.constant 0 : i32
    return %c0_i32, %c0_i32_0 : i32, i32
  }
  func.func @transform_2(%arg0: i32) -> (i32, i32) {
    %c0_i32 = arith.constant 0 : i32
    %c0_i32_0 = arith.constant 0 : i32
    %c0_i32_1 = arith.constant 0 : i32
    return %c0_i32, %c0_i32_0 : i32, i32
  }
  func.func @transform_3(%arg0: i32) -> (i32, i32) {
    %c0_i32 = arith.constant 0 : i32
    %c0_i32_0 = arith.constant 0 : i32
    return %arg0, %c0_i32 : i32, i32
  }
}

</mosaic_0001>

<bundles_post_ra>
// kernel: adagae_forward.4
= control target key start
LH: loop header
LB: loop body
LE: loop exit
PB: predicated region body
PF: predicated region fallthrough
CT: control target
= control target key end

     0   :  { %vm188_vm0 = vcmask 130048   ;;  %s520_s1 = inlined_call_operand.vmem [shape: f32[128,16], index: 1, kind: input, shape index: {}]   ;;  %s521_s0 = inlined_call_operand.vmem [shape: f32[128,128], index: 0, kind: input, shape index: {}]   ;;  %s522_s2 = inlined_call_operand.vmem [shape: f32[128,16], index: 2, kind: output, shape index: {}]  }
   0x1   :  { %v27_v0 = vld [vmem:[%s520_s1] sm:$0xff]  ;;  %v28_v1 = vld [vmem:[%s520_s1 + $0x8] sm:$0xff]  ;;  %v29_v2 = vld [vmem:[%s520_s1 + $0x10] sm:$0xff] }
   0x2   :  { %v297_v3 = vpack.c.bf16 %v28_v1, %v27_v0  ;;  %v30_v4 = vld [vmem:[%s520_s1 + $0x18] sm:$0xff]  ;;  %v31_v6 = vld [vmem:[%s520_s1 + $0x20] sm:$0xff]  ;;  %v32_v7 = vld [vmem:[%s520_s1 + $0x28] sm:$0xff] }
   0x3   :  { %v301_v5 = vpack.c.bf16 %v30_v4, %v29_v2  ;;  %v305_v8 = vpack.c.bf16 %v32_v7, %v31_v6  ;;  %v11_v9 = vld [vmem:[%s521_s0] sm:$0xff]  ;;  %v33_v11 = vld [vmem:[%s520_s1 + $0x30] sm:$0xff]  ;;  %v34_v12 = vld [vmem:[%s520_s1 + $0x38] sm:$0xff] }
   0x4   :  { %298 = vmatprep.subr.bf16.mxu0 %v297_v3  ;;  %329 = vmatprep.subr.bf16.mxu1 %v297_v3  ;;  %v19_v10 = vld [vmem:[%s521_s0 + $0x40] sm:$0xff]  ;;  %v309_v13 = vpack.c.bf16 %v34_v12, %v33_v11  ;;  %v36_v15 = vld [vmem:[%s520_s1 + $0x48] sm:$0xff]  ;;  %v37_v17 = vld [vmem:[%s520_s1 + $0x50] sm:$0xff] }
   0x5   :  { %300 = vmatpush3.bf16.msra.mxu0 %v297_v3  ;;  %337 = vmatpush3.bf16.msra.mxu1 %v297_v3  ;;  %v35_v14 = vld [vmem:[%s520_s1 + $0x40] sm:$0xff]  ;;  %v38_v18 = vld [vmem:[%s520_s1 + $0x58] sm:$0xff]  ;;  %v40_v21 = vld [vmem:[%s520_s1 + $0x68] sm:$0xff] }
   0x6   :  { %302 = vmatprep.subr.bf16.mxu0 %v301_v5  ;;  %330 = vmatprep.subr.bf16.mxu1 %v301_v5  ;;  %v313_v16 = vpack.c.bf16 %v36_v15, %v35_v14  ;;  %v317_v19 = vpack.c.bf16 %v38_v18, %v37_v17  ;;  %v39_v20 = vld [vmem:[%s520_s1 + $0x60] sm:$0xff]  ;;  %v41_v23 = vld [vmem:[%s520_s1 + $0x70] sm:$0xff]  ;;  %v42_v24 = vld [vmem:[%s520_s1 + $0x78] sm:$0xff] }
   0x7   :  { %273 = vmatprep.mubr.f32.mxu0 %v11_v9  ;;  %285 = vmatprep.mubr.f32.mxu1 %v19_v10  ;;  %v321_v22 = vpack.c.bf16 %v40_v21, %v39_v20  ;;  %v325_v25 = vpack.c.bf16 %v42_v24, %v41_v23  ;;  %v12_v26 = vld [vmem:[%s521_s0 + $0x8] sm:$0xff]  ;;  %v13_v28 = vld [vmem:[%s521_s0 + $0x10] sm:$0xff]  ;;  %v14_v30 = vld [vmem:[%s521_s0 + $0x18] sm:$0xff] }
   0x8   :  { %v20_v27 = vld [vmem:[%s521_s0 + $0x48] sm:$0xff]  ;;  %v21_v29 = vld [vmem:[%s521_s0 + $0x50] sm:$0xff]  ;;  %v22_v31 = vld [vmem:[%s521_s0 + $0x58] sm:$0xff] }
   0x9   :  { %304 = vmatpush3.bf16.msra.mxu0 %v301_v5  ;;  %338 = vmatpush3.bf16.msra.mxu1 %v301_v5  ;;  %v15_v32 = vld [vmem:[%s521_s0 + $0x20] sm:$0xff]  ;;  %v16_v34 = vld [vmem:[%s521_s0 + $0x28] sm:$0xff]  ;;  %v17_v36 = vld [vmem:[%s521_s0 + $0x30] sm:$0xff] }
   0xa   :  { %306 = vmatprep.subr.bf16.mxu0 %v305_v8  ;;  %331 = vmatprep.subr.bf16.mxu1 %v305_v8  ;;  %v23_v33 = vld [vmem:[%s521_s0 + $0x60] sm:$0xff]  ;;  %v24_v35 = vld [vmem:[%s521_s0 + $0x68] sm:$0xff]  ;;  %v25_v37 = vld [vmem:[%s521_s0 + $0x70] sm:$0xff] }
   0xb   :  { %v18_v38 = vld [vmem:[%s521_s0 + $0x38] sm:$0xff] }
   0xc   :  { %v26_v39 = vld [vmem:[%s521_s0 + $0x78] sm:$0xff] }
   0xd   :  { %308 = vmatpush3.bf16.msra.mxu0 %v305_v8  ;;  %339 = vmatpush3.bf16.msra.mxu1 %v305_v8 }
   0xe   :  { %310 = vmatprep.subr.bf16.mxu0 %v309_v13  ;;  %332 = vmatprep.subr.bf16.mxu1 %v309_v13 }
  0x11   :  { %312 = vmatpush3.bf16.msra.mxu0 %v309_v13  ;;  %340 = vmatpush3.bf16.msra.mxu1 %v309_v13 }
  0x12   :  { %314 = vmatprep.subr.bf16.mxu0 %v313_v16  ;;  %333 = vmatprep.subr.bf16.mxu1 %v313_v16 }
  0x15   :  { %316 = vmatpush3.bf16.msra.mxu0 %v313_v16  ;;  %341 = vmatpush3.bf16.msra.mxu1 %v313_v16 }
  0x16   :  { %318 = vmatprep.subr.bf16.mxu0 %v317_v19  ;;  %334 = vmatprep.subr.bf16.mxu1 %v317_v19 }
  0x19   :  { %320 = vmatpush3.bf16.msra.mxu0 %v317_v19  ;;  %342 = vmatpush3.bf16.msra.mxu1 %v317_v19 }
  0x1a   :  { %322 = vmatprep.subr.bf16.mxu0 %v321_v22  ;;  %335 = vmatprep.subr.bf16.mxu1 %v321_v22 }
  0x1d   :  { %324 = vmatpush3.bf16.msra.mxu0 %v321_v22  ;;  %343 = vmatpush3.bf16.msra.mxu1 %v321_v22 }
  0x1e   :  { %326 = vmatprep.subr.bf16.mxu0 %v325_v25  ;;  %336 = vmatprep.subr.bf16.mxu1 %v325_v25 }
  0x21   :  { %328 = vmatpush3.bf16.msra.mxu0 %v325_v25  ;;  %344 = vmatpush3.bf16.msra.mxu1 %v325_v25 }
  0x24   :  { %274 = vmatmul.mubr.f32.vlgmr.msra.gmra.mrb[0].mxu0 %v12_v26  ;;  %286 = vmatmul.mubr.f32.vlgmr.msra.gmra.mrb[0].mxu1 %v20_v27 }
  0x25   :  { %276 = vmatprep.mubr.f32.mxu0 %v13_v28  ;;  %288 = vmatprep.mubr.f32.mxu1 %v21_v29 }
  0x28   :  { %277 = vmatmul.mubr.f32.gmra.mrb[2].mxu0 %v14_v30  ;;  %289 = vmatmul.mubr.f32.gmra.mrb[2].mxu1 %v22_v31 }
  0x29   :  { %279 = vmatprep.mubr.f32.mxu0 %v15_v32  ;;  %291 = vmatprep.mubr.f32.mxu1 %v23_v33 }
  0x2c   :  { %280 = vmatmul.mubr.f32.gmra.mrb[4].mxu0 %v16_v34  ;;  %292 = vmatmul.mubr.f32.gmra.mrb[4].mxu1 %v24_v35 }
  0x2d   :  { %282 = vmatprep.mubr.f32.mxu0 %v17_v36  ;;  %294 = vmatprep.mubr.f32.mxu1 %v25_v37 }
  0x30   :  { %283 = vmatmul.mubr.f32.gmra.mrb[6].mxu0 %v18_v38  ;;  %295 = vmatmul.mubr.f32.gmra.mrb[6].mxu1 %v26_v39 }
  0xf7   :  { %v275_v40 = vpop.f32.mrb[0].mxu0  ;;  %v287_v41 = vpop.f32.mrb[0].mxu1 }
  0xf8   :  { %190 = vst.msk [vmem:[%s522_s2 + $0x8] sm:$0xff] %vm188_vm0, %v275_v40  ;;  %198 = vst.msk [vmem:[%s522_s2 + $0x48] sm:$0xff] %vm188_vm0, %v287_v41  ;;  %v109_v42 = vpop.f32.mrb[1].mxu0  ;;  %v149_v43 = vpop.f32.mrb[1].mxu1 }
  0xf9   :  { %189 = vst.msk [vmem:[%s522_s2] sm:$0xff] %vm188_vm0, %v109_v42  ;;  %197 = vst.msk [vmem:[%s522_s2 + $0x40] sm:$0xff] %vm188_vm0, %v149_v43 }
  0xfb   :  { %v278_v44 = vpop.f32.mrb[2].mxu0  ;;  %v290_v45 = vpop.f32.mrb[2].mxu1 }
  0xfc   :  { %192 = vst.msk [vmem:[%s522_s2 + $0x18] sm:$0xff] %vm188_vm0, %v278_v44  ;;  %200 = vst.msk [vmem:[%s522_s2 + $0x58] sm:$0xff] %vm188_vm0, %v290_v45  ;;  %v119_v46 = vpop.f32.mrb[3].mxu0  ;;  %v159_v47 = vpop.f32.mrb[3].mxu1 }
  0xfd   :  { %191 = vst.msk [vmem:[%s522_s2 + $0x10] sm:$0xff] %vm188_vm0, %v119_v46  ;;  %199 = vst.msk [vmem:[%s522_s2 + $0x50] sm:$0xff] %vm188_vm0, %v159_v47 }
  0xff   :  { %v281_v48 = vpop.f32.mrb[4].mxu0  ;;  %v293_v49 = vpop.f32.mrb[4].mxu1 }
 0x100   :  { %194 = vst.msk [vmem:[%s522_s2 + $0x28] sm:$0xff] %vm188_vm0, %v281_v48  ;;  %202 = vst.msk [vmem:[%s522_s2 + $0x68] sm:$0xff] %vm188_vm0, %v293_v49  ;;  %v129_v50 = vpop.f32.mrb[5].mxu0  ;;  %v169_v51 = vpop.f32.mrb[5].mxu1 }
 0x101   :  { %193 = vst.msk [vmem:[%s522_s2 + $0x20] sm:$0xff] %vm188_vm0, %v129_v50  ;;  %201 = vst.msk [vmem:[%s522_s2 + $0x60] sm:$0xff] %vm188_vm0, %v169_v51 }
 0x103   :  { %v284_v52 = vpop.f32.mrb[6].mxu0  ;;  %v296_v53 = vpop.f32.mrb[6].mxu1 }
 0x104   :  { %196 = vst.msk [vmem:[%s522_s2 + $0x38] sm:$0xff] %vm188_vm0, %v284_v52  ;;  %204 = vst.msk [vmem:[%s522_s2 + $0x78] sm:$0xff] %vm188_vm0, %v296_v53  ;;  %v139_v54 = vpop.f32.mrb[7].mxu0  ;;  %v179_v55 = vpop.f32.mrb[7].mxu1 }
 0x105   :  { %195 = vst.msk [vmem:[%s522_s2 + $0x30] sm:$0xff] %vm188_vm0, %v139_v54  ;;  %203 = vst.msk [vmem:[%s522_s2 + $0x70] sm:$0xff] %vm188_vm0, %v179_v55 }

// kernel: adagae_forward.3
= control target key start
LH: loop header
LB: loop body
LE: loop exit
PB: predicated region body
PF: predicated region fallthrough
CT: control target
= control target key end

     0   :  { %vm204_vm0 = vcmask 261120   ;;  %s536_s1 = inlined_call_operand.vmem [shape: f32[128,32], index: 1, kind: input, shape index: {}]   ;;  %s537_s0 = inlined_call_operand.vmem [shape: f32[128,128], index: 0, kind: input, shape index: {}]   ;;  %s538_s2 = inlined_call_operand.vmem [shape: f32[128,32], index: 2, kind: output, shape index: {}]  }
   0x1   :  { %v27_v0 = vld [vmem:[%s536_s1] sm:$0xff]  ;;  %v28_v1 = vld [vmem:[%s536_s1 + $0x8] sm:$0xff]  ;;  %v29_v2 = vld [vmem:[%s536_s1 + $0x10] sm:$0xff] }
   0x2   :  { %v313_v3 = vpack.c.bf16 %v28_v1, %v27_v0  ;;  %v30_v4 = vld [vmem:[%s536_s1 + $0x18] sm:$0xff]  ;;  %v31_v6 = vld [vmem:[%s536_s1 + $0x20] sm:$0xff]  ;;  %v32_v7 = vld [vmem:[%s536_s1 + $0x28] sm:$0xff] }
   0x3   :  { %v317_v5 = vpack.c.bf16 %v30_v4, %v29_v2  ;;  %v321_v8 = vpack.c.bf16 %v32_v7, %v31_v6  ;;  %v11_v9 = vld [vmem:[%s537_s0] sm:$0xff]  ;;  %v33_v11 = vld [vmem:[%s536_s1 + $0x30] sm:$0xff]  ;;  %v34_v12 = vld [vmem:[%s536_s1 + $0x38] sm:$0xff] }
   0x4   :  { %314 = vmatprep.subr.bf16.mxu0 %v313_v3  ;;  %345 = vmatprep.subr.bf16.mxu1 %v313_v3  ;;  %v19_v10 = vld [vmem:[%s537_s0 + $0x40] sm:$0xff]  ;;  %v325_v13 = vpack.c.bf16 %v34_v12, %v33_v11  ;;  %v36_v15 = vld [vmem:[%s536_s1 + $0x48] sm:$0xff]  ;;  %v37_v17 = vld [vmem:[%s536_s1 + $0x50] sm:$0xff] }
   0x5   :  { %316 = vmatpush3.bf16.msra.mxu0 %v313_v3  ;;  %353 = vmatpush3.bf16.msra.mxu1 %v313_v3  ;;  %v35_v14 = vld [vmem:[%s536_s1 + $0x40] sm:$0xff]  ;;  %v38_v18 = vld [vmem:[%s536_s1 + $0x58] sm:$0xff]  ;;  %v40_v21 = vld [vmem:[%s536_s1 + $0x68] sm:$0xff] }
   0x6   :  { %318 = vmatprep.subr.bf16.mxu0 %v317_v5  ;;  %346 = vmatprep.subr.bf16.mxu1 %v317_v5  ;;  %v329_v16 = vpack.c.bf16 %v36_v15, %v35_v14  ;;  %v333_v19 = vpack.c.bf16 %v38_v18, %v37_v17  ;;  %v39_v20 = vld [vmem:[%s536_s1 + $0x60] sm:$0xff]  ;;  %v41_v23 = vld [vmem:[%s536_s1 + $0x70] sm:$0xff]  ;;  %v42_v24 = vld [vmem:[%s536_s1 + $0x78] sm:$0xff] }
   0x7   :  { %289 = vmatprep.mubr.f32.mxu0 %v11_v9  ;;  %301 = vmatprep.mubr.f32.mxu1 %v19_v10  ;;  %v337_v22 = vpack.c.bf16 %v40_v21, %v39_v20  ;;  %v341_v25 = vpack.c.bf16 %v42_v24, %v41_v23  ;;  %v12_v26 = vld [vmem:[%s537_s0 + $0x8] sm:$0xff]  ;;  %v13_v28 = vld [vmem:[%s537_s0 + $0x10] sm:$0xff]  ;;  %v14_v30 = vld [vmem:[%s537_s0 + $0x18] sm:$0xff] }
   0x8   :  { %v20_v27 = vld [vmem:[%s537_s0 + $0x48] sm:$0xff]  ;;  %v21_v29 = vld [vmem:[%s537_s0 + $0x50] sm:$0xff]  ;;  %v22_v31 = vld [vmem:[%s537_s0 + $0x58] sm:$0xff] }
   0x9   :  { %320 = vmatpush3.bf16.msra.mxu0 %v317_v5  ;;  %354 = vmatpush3.bf16.msra.mxu1 %v317_v5  ;;  %v15_v32 = vld [vmem:[%s537_s0 + $0x20] sm:$0xff]  ;;  %v16_v34 = vld [vmem:[%s537_s0 + $0x28] sm:$0xff]  ;;  %v17_v36 = vld [vmem:[%s537_s0 + $0x30] sm:$0xff] }
   0xa   :  { %322 = vmatprep.subr.bf16.mxu0 %v321_v8  ;;  %347 = vmatprep.subr.bf16.mxu1 %v321_v8  ;;  %v23_v33 = vld [vmem:[%s537_s0 + $0x60] sm:$0xff]  ;;  %v24_v35 = vld [vmem:[%s537_s0 + $0x68] sm:$0xff]  ;;  %v25_v37 = vld [vmem:[%s537_s0 + $0x70] sm:$0xff] }
   0xb   :  { %v18_v38 = vld [vmem:[%s537_s0 + $0x38] sm:$0xff] }
   0xc   :  { %v26_v39 = vld [vmem:[%s537_s0 + $0x78] sm:$0xff] }
   0xd   :  { %324 = vmatpush3.bf16.msra.mxu0 %v321_v8  ;;  %355 = vmatpush3.bf16.msra.mxu1 %v321_v8 }
   0xe   :  { %326 = vmatprep.subr.bf16.mxu0 %v325_v13  ;;  %348 = vmatprep.subr.bf16.mxu1 %v325_v13 }
  0x11   :  { %328 = vmatpush3.bf16.msra.mxu0 %v325_v13  ;;  %356 = vmatpush3.bf16.msra.mxu1 %v325_v13 }
  0x12   :  { %330 = vmatprep.subr.bf16.mxu0 %v329_v16  ;;  %349 = vmatprep.subr.bf16.mxu1 %v329_v16 }
  0x15   :  { %332 = vmatpush3.bf16.msra.mxu0 %v329_v16  ;;  %357 = vmatpush3.bf16.msra.mxu1 %v329_v16 }
  0x16   :  { %334 = vmatprep.subr.bf16.mxu0 %v333_v19  ;;  %350 = vmatprep.subr.bf16.mxu1 %v333_v19 }
  0x19   :  { %336 = vmatpush3.bf16.msra.mxu0 %v333_v19  ;;  %358 = vmatpush3.bf16.msra.mxu1 %v333_v19 }
  0x1a   :  { %338 = vmatprep.subr.bf16.mxu0 %v337_v22  ;;  %351 = vmatprep.subr.bf16.mxu1 %v337_v22 }
  0x1d   :  { %340 = vmatpush3.bf16.msra.mxu0 %v337_v22  ;;  %359 = vmatpush3.bf16.msra.mxu1 %v337_v22 }
  0x1e   :  { %342 = vmatprep.subr.bf16.mxu0 %v341_v25  ;;  %352 = vmatprep.subr.bf16.mxu1 %v341_v25 }
  0x21   :  { %344 = vmatpush3.bf16.msra.mxu0 %v341_v25  ;;  %360 = vmatpush3.bf16.msra.mxu1 %v341_v25 }
  0x24   :  { %290 = vmatmul.mubr.f32.vlgmr.msra.gmra.mrb[0].mxu0 %v12_v26  ;;  %302 = vmatmul.mubr.f32.vlgmr.msra.gmra.mrb[0].mxu1 %v20_v27 }
  0x25   :  { %292 = vmatprep.mubr.f32.mxu0 %v13_v28  ;;  %304 = vmatprep.mubr.f32.mxu1 %v21_v29 }
  0x28   :  { %293 = vmatmul.mubr.f32.gmra.mrb[2].mxu0 %v14_v30  ;;  %305 = vmatmul.mubr.f32.gmra.mrb[2].mxu1 %v22_v31 }
  0x29   :  { %295 = vmatprep.mubr.f32.mxu0 %v15_v32  ;;  %307 = vmatprep.mubr.f32.mxu1 %v23_v33 }
  0x2c   :  { %296 = vmatmul.mubr.f32.gmra.mrb[4].mxu0 %v16_v34  ;;  %308 = vmatmul.mubr.f32.gmra.mrb[4].mxu1 %v24_v35 }
  0x2d   :  { %298 = vmatprep.mubr.f32.mxu0 %v17_v36  ;;  %310 = vmatprep.mubr.f32.mxu1 %v25_v37 }
  0x30   :  { %299 = vmatmul.mubr.f32.gmra.mrb[6].mxu0 %v18_v38  ;;  %311 = vmatmul.mubr.f32.gmra.mrb[6].mxu1 %v26_v39 }
  0xf7   :  { %v291_v40 = vpop.f32.mrb[0].mxu0  ;;  %v303_v41 = vpop.f32.mrb[0].mxu1 }
  0xf8   :  { %v189_v42 = vmax.f32 %v291_v40, 0.0  ;;  %v197_v43 = vmax.f32 %v303_v41, 0.0  ;;  %v109_v44 = vpop.f32.mrb[1].mxu0  ;;  %v149_v45 = vpop.f32.mrb[1].mxu1 }
  0xf9   :  { %v188_v46 = vmax.f32 %v109_v44, 0.0  ;;  %v196_v47 = vmax.f32 %v149_v45, 0.0 }
  0xfa   :  { %206 = vst.msk [vmem:[%s538_s2 + $0x8] sm:$0xff] %vm204_vm0, %v189_v42  ;;  %214 = vst.msk [vmem:[%s538_s2 + $0x48] sm:$0xff] %vm204_vm0, %v197_v43 }
  0xfb   :  { %205 = vst.msk [vmem:[%s538_s2] sm:$0xff] %vm204_vm0, %v188_v46  ;;  %213 = vst.msk [vmem:[%s538_s2 + $0x40] sm:$0xff] %vm204_vm0, %v196_v47  ;;  %v294_v48 = vpop.f32.mrb[2].mxu0  ;;  %v306_v49 = vpop.f32.mrb[2].mxu1 }
  0xfc   :  { %v191_v50 = vmax.f32 %v294_v48, 0.0  ;;  %v199_v51 = vmax.f32 %v306_v49, 0.0  ;;  %v119_v52 = vpop.f32.mrb[3].mxu0  ;;  %v159_v53 = vpop.f32.mrb[3].mxu1 }
  0xfd   :  { %v190_v54 = vmax.f32 %v119_v52, 0.0  ;;  %v198_v55 = vmax.f32 %v159_v53, 0.0 }
  0xfe   :  { %208 = vst.msk [vmem:[%s538_s2 + $0x18] sm:$0xff] %vm204_vm0, %v191_v50  ;;  %216 = vst.msk [vmem:[%s538_s2 + $0x58] sm:$0xff] %vm204_vm0, %v199_v51 }
  0xff   :  { %207 = vst.msk [vmem:[%s538_s2 + $0x10] sm:$0xff] %vm204_vm0, %v190_v54  ;;  %215 = vst.msk [vmem:[%s538_s2 + $0x50] sm:$0xff] %vm204_vm0, %v198_v55  ;;  %v297_v56 = vpop.f32.mrb[4].mxu0  ;;  %v309_v57 = vpop.f32.mrb[4].mxu1 }
 0x100   :  { %v193_v58 = vmax.f32 %v297_v56, 0.0  ;;  %v201_v59 = vmax.f32 %v309_v57, 0.0  ;;  %v129_v60 = vpop.f32.mrb[5].mxu0  ;;  %v169_v61 = vpop.f32.mrb[5].mxu1 }
 0x101   :  { %v192_v62 = vmax.f32 %v129_v60, 0.0  ;;  %v200_v63 = vmax.f32 %v169_v61, 0.0 }
 0x102   :  { %210 = vst.msk [vmem:[%s538_s2 + $0x28] sm:$0xff] %vm204_vm0, %v193_v58  ;;  %218 = vst.msk [vmem:[%s538_s2 + $0x68] sm:$0xff] %vm204_vm0, %v201_v59 }
 0x103   :  { %209 = vst.msk [vmem:[%s538_s2 + $0x20] sm:$0xff] %vm204_vm0, %v192_v62  ;;  %217 = vst.msk [vmem:[%s538_s2 + $0x60] sm:$0xff] %vm204_vm0, %v200_v63  ;;  %v300_v0 = vpop.f32.mrb[6].mxu0  ;;  %v312_v1 = vpop.f32.mrb[6].mxu1 }
 0x104   :  { %v195_v2 = vmax.f32 %v300_v0, 0.0  ;;  %v203_v3 = vmax.f32 %v312_v1, 0.0  ;;  %v139_v4 = vpop.f32.mrb[7].mxu0  ;;  %v179_v5 = vpop.f32.mrb[7].mxu1 }
 0x105   :  { %v194_v6 = vmax.f32 %v139_v4, 0.0  ;;  %v202_v7 = vmax.f32 %v179_v5, 0.0 }
 0x106   :  { %212 = vst.msk [vmem:[%s538_s2 + $0x38] sm:$0xff] %vm204_vm0, %v195_v2  ;;  %220 = vst.msk [vmem:[%s538_s2 + $0x78] sm:$0xff] %vm204_vm0, %v203_v3 }
 0x107   :  { %211 = vst.msk [vmem:[%s538_s2 + $0x30] sm:$0xff] %vm204_vm0, %v194_v6  ;;  %219 = vst.msk [vmem:[%s538_s2 + $0x70] sm:$0xff] %vm204_vm0, %v202_v7 }

// kernel: adagae_forward.5
= control target key start
LH: loop header
LB: loop body
LE: loop exit
PB: predicated region body
PF: predicated region fallthrough
CT: control target
= control target key end

     0   :  { %vm47_vm0 = vcmask 130048   ;;  %s1120_s0 = inlined_call_operand.vmem [shape: f32[128,16], index: 0, kind: input, shape index: {}, may-alias: {0,1}]   ;;  %s1121_s1 = inlined_call_operand.vmem [shape: f32[128,16], index: 1, kind: input, shape index: {}, may-alias: {0,1}]   ;;  %s1122_s2 = inlined_call_operand.vmem [shape: f32[1,128], index: 2, kind: input, shape index: {}]   ;;  %s1123_s3 = inlined_call_operand.hbm [shape: f32[128,128], index: 3, kind: output, shape index: {}]  }
   0x1   :  { %v31_v0 = vld [vmem:[%s1121_s1] sm:$0xff]  ;;  %v32_v1 = vld [vmem:[%s1121_s1 + $0x8] sm:$0xff]  ;;  %v33_v2 = vld [vmem:[%s1121_s1 + $0x10] sm:$0xff] }
   0x2   :  { %v641_v3 = vpack.c.bf16 %v32_v1, %v31_v0  ;;  %vm830_vm1 = vmpackc.low %vm47_vm0, %vm47_vm0  ;;  %v34_v5 = vld [vmem:[%s1121_s1 + $0x18] sm:$0xff]  ;;  %v15_v7 = vld [vmem:[%s1120_s0] sm:$0xff] }
   0x3   :  { %v647_v6 = vpack.c.bf16 %v34_v5, %v33_v2  ;;  %v35_v8 = vld [vmem:[%s1121_s1 + $0x20] sm:$0xff]  ;;  %v36_v9 = vld [vmem:[%s1121_s1 + $0x28] sm:$0xff]  ;;  %617 = vmatprep.mubr.msk.f32.mxu0 %vm47_vm0, %v15_v7 }
   0x4   :  { %643 = vmatprep.subr.msk.bf16.mxu0 %vm830_vm1, %v641_v3  ;;  %689 = vmatprep.subr.msk.bf16.mxu1 %vm830_vm1, %v641_v3  ;;  %v23_v10 = vld [vmem:[%s1120_s0 + $0x40] sm:$0xff]  ;;  %v653_v11 = vpack.c.bf16 %v36_v9, %v35_v8 }
   0x5   :  { %646 = vmatpush3.bf16.xpose.msk.msra.mxu0 %vm830_vm1, %v641_v3  ;;  %697 = vmatpush3.bf16.xpose.msk.msra.mxu1 %vm830_vm1, %v641_v3 }
   0x6   :  { %649 = vmatprep.subr.msk.bf16.mxu0 %vm830_vm1, %v647_v6  ;;  %690 = vmatprep.subr.msk.bf16.mxu1 %vm830_vm1, %v647_v6 }
   0x7   :  { %629 = vmatprep.mubr.msk.f32.mxu1 %vm47_vm0, %v23_v10 }
   0x8   :  { %8 = vsyncpa [#allocation3], 0  ;;  %v37_v12 = vld [vmem:[%s1121_s1 + $0x30] sm:$0xff]  ;;  %v38_v13 = vld [vmem:[%s1121_s1 + $0x38] sm:$0xff] }
   0x9   :  { %v659_v14 = vpack.c.bf16 %v38_v13, %v37_v12  ;;  %v39_v15 = vld [vmem:[%s1121_s1 + $0x40] sm:$0xff]  ;;  %v40_v16 = vld [vmem:[%s1121_s1 + $0x48] sm:$0xff]  ;;  %v41_v18 = vld [vmem:[%s1121_s1 + $0x50] sm:$0xff] }
   0xa   :  { %v665_v17 = vpack.c.bf16 %v40_v16, %v39_v15  ;;  %v42_v19 = vld [vmem:[%s1121_s1 + $0x58] sm:$0xff]  ;;  %v43_v21 = vld [vmem:[%s1121_s1 + $0x60] sm:$0xff]  ;;  %v44_v22 = vld [vmem:[%s1121_s1 + $0x68] sm:$0xff] }
   0xb   :  { %v671_v20 = vpack.c.bf16 %v42_v19, %v41_v18  ;;  %v677_v23 = vpack.c.bf16 %v44_v22, %v43_v21  ;;  %v45_v24 = vld [vmem:[%s1121_s1 + $0x70] sm:$0xff]  ;;  %v46_v25 = vld [vmem:[%s1121_s1 + $0x78] sm:$0xff]  ;;  %v16_v27 = vld [vmem:[%s1120_s0 + $0x8] sm:$0xff] }
   0xc   :  { %v683_v26 = vpack.c.bf16 %v46_v25, %v45_v24  ;;  %v24_v28 = vld [vmem:[%s1120_s0 + $0x48] sm:$0xff]  ;;  %v17_v29 = vld [vmem:[%s1120_s0 + $0x10] sm:$0xff]  ;;  %v18_v31 = vld [vmem:[%s1120_s0 + $0x18] sm:$0xff] }
   0xd   :  { %652 = vmatpush3.bf16.xpose.msk.msra.mxu0 %vm830_vm1, %v647_v6  ;;  %698 = vmatpush3.bf16.xpose.msk.msra.mxu1 %vm830_vm1, %v647_v6  ;;  %v25_v30 = vld [vmem:[%s1120_s0 + $0x50] sm:$0xff]  ;;  %v26_v32 = vld [vmem:[%s1120_s0 + $0x58] sm:$0xff]  ;;  %v19_v33 = vld [vmem:[%s1120_s0 + $0x20] sm:$0xff] }
   0xe   :  { %655 = vmatprep.subr.msk.bf16.mxu0 %vm830_vm1, %v653_v11  ;;  %691 = vmatprep.subr.msk.bf16.mxu1 %vm830_vm1, %v653_v11  ;;  %v27_v34 = vld [vmem:[%s1120_s0 + $0x60] sm:$0xff]  ;;  %v20_v35 = vld [vmem:[%s1120_s0 + $0x28] sm:$0xff]  ;;  %v21_v37 = vld [vmem:[%s1120_s0 + $0x30] sm:$0xff] }
   0xf   :  { %v28_v36 = vld [vmem:[%s1120_s0 + $0x68] sm:$0xff]  ;;  %v29_v38 = vld [vmem:[%s1120_s0 + $0x70] sm:$0xff]  ;;  %v22_v39 = vld [vmem:[%s1120_s0 + $0x38] sm:$0xff] }
  0x10   :  { %v30_v40 = vld [vmem:[%s1120_s0 + $0x78] sm:$0xff]  ;;  %v552_v43 = vld [vmem:[%s1122_s2] ss:$0 sm:$0xff]  ;;  %s796_s0 = smov [#allocation2]  }
  0x11   :  { %s509_s2 = sshll.u32 %s796_s0, 4  ;;  %s510_s2 = int_to_ptr.vmem [resolvable:$true] %s509_s2 }
  0x12   :  { %s772_s22 = scalar_lea.vmem %s510_s2, 2048  ;;  %p777_p1 = scmp.lt.s32.totalorder %s510_s2, %s510_s2 }
  0x13   :  { %p773_p0 = scmp.ne.s32.totalorder %s510_s2, %s772_s22  ;;  %p778_p2 = scmp.lt.s32.totalorder %s772_s22, %s772_s22 }
  0x15   :  { %658 = vmatpush3.bf16.xpose.msk.msra.mxu0 %vm830_vm1, %v653_v11  ;;  %699 = vmatpush3.bf16.xpose.msk.msra.mxu1 %vm830_vm1, %v653_v11  ;;  %p779_p3 = por %p778_p2, %p777_p1 }
  0x16   :  { %661 = vmatprep.subr.msk.bf16.mxu0 %vm830_vm1, %v659_v14  ;;  %692 = vmatprep.subr.msk.bf16.mxu1 %vm830_vm1, %v659_v14 }
  0x17   :  { %p780_p4 = pnand %p779_p3, %p773_p0 }
  0x1d   :  { %664 = vmatpush3.bf16.xpose.msk.msra.mxu0 %vm830_vm1, %v659_v14  ;;  %700 = vmatpush3.bf16.xpose.msk.msra.mxu1 %vm830_vm1, %v659_v14 }
  0x1e   :  { %667 = vmatprep.subr.msk.bf16.mxu0 %vm830_vm1, %v665_v17  ;;  %693 = vmatprep.subr.msk.bf16.mxu1 %vm830_vm1, %v665_v17 }
  0x25   :  { %670 = vmatpush3.bf16.xpose.msk.msra.mxu0 %vm830_vm1, %v665_v17  ;;  %701 = vmatpush3.bf16.xpose.msk.msra.mxu1 %vm830_vm1, %v665_v17 }
  0x26   :  { %673 = vmatprep.subr.msk.bf16.mxu0 %vm830_vm1, %v671_v20  ;;  %694 = vmatprep.subr.msk.bf16.mxu1 %vm830_vm1, %v671_v20 }
  0x2d   :  { %676 = vmatpush3.bf16.xpose.msk.msra.mxu0 %vm830_vm1, %v671_v20  ;;  %702 = vmatpush3.bf16.xpose.msk.msra.mxu1 %vm830_vm1, %v671_v20 }
  0x2e   :  { %679 = vmatprep.subr.msk.bf16.mxu0 %vm830_vm1, %v677_v23  ;;  %695 = vmatprep.subr.msk.bf16.mxu1 %vm830_vm1, %v677_v23 }
  0x35   :  { %682 = vmatpush3.bf16.xpose.msk.msra.mxu0 %vm830_vm1, %v677_v23  ;;  %703 = vmatpush3.bf16.xpose.msk.msra.mxu1 %vm830_vm1, %v677_v23 }
  0x36   :  { %685 = vmatprep.subr.msk.bf16.mxu0 %vm830_vm1, %v683_v26  ;;  %696 = vmatprep.subr.msk.bf16.mxu1 %vm830_vm1, %v683_v26 }
  0x3d   :  { %688 = vmatpush3.bf16.xpose.msk.msra.mxu0 %vm830_vm1, %v683_v26  ;;  %704 = vmatpush3.bf16.xpose.msk.msra.mxu1 %vm830_vm1, %v683_v26 }
  0x44   :  { %618 = vmatmul.mubr.msk.f32.vlgmr.msra.gmra.mrb[0].mxu0 %vm47_vm0, %v16_v27  ;;  %630 = vmatmul.mubr.msk.f32.vlgmr.msra.gmra.mrb[0].mxu1 %vm47_vm0, %v24_v28 }
  0x45   :  { %620 = vmatprep.mubr.msk.f32.mxu0 %vm47_vm0, %v17_v29  ;;  %632 = vmatprep.mubr.msk.f32.mxu1 %vm47_vm0, %v25_v30 }
  0x48   :  { %621 = vmatmul.mubr.msk.f32.gmra.mrb[2].mxu0 %vm47_vm0, %v18_v31  ;;  %633 = vmatmul.mubr.msk.f32.gmra.mrb[2].mxu1 %vm47_vm0, %v26_v32 }
  0x49   :  { %623 = vmatprep.mubr.msk.f32.mxu0 %vm47_vm0, %v19_v33  ;;  %635 = vmatprep.mubr.msk.f32.mxu1 %vm47_vm0, %v27_v34 }
  0x4c   :  { %624 = vmatmul.mubr.msk.f32.gmra.mrb[4].mxu0 %vm47_vm0, %v20_v35  ;;  %636 = vmatmul.mubr.msk.f32.gmra.mrb[4].mxu1 %vm47_vm0, %v28_v36 }
  0x4d   :  { %626 = vmatprep.mubr.msk.f32.mxu0 %vm47_vm0, %v21_v37  ;;  %638 = vmatprep.mubr.msk.f32.mxu1 %vm47_vm0, %v29_v38 }
  0x50   :  { %627 = vmatmul.mubr.msk.f32.gmra.mrb[6].mxu0 %vm47_vm0, %v22_v39  ;;  %639 = vmatmul.mubr.msk.f32.gmra.mrb[6].mxu1 %vm47_vm0, %v30_v40 }
 0x117   :  { %v619_v41 = vpop.f32.mrb[0].mxu0  ;;  %v631_v42 = vpop.f32.mrb[0].mxu1 }
 0x118   :  { %v290_v44 = vmul.f32 2.0, %v619_v41  ;;  %v298_v45 = vmul.f32 2.0, %v631_v42  ;;  %v210_v46 = vpop.f32.mrb[1].mxu0  ;;  %v250_v47 = vpop.f32.mrb[1].mxu1 }
 0x119   :  { %v289_v48 = vmul.f32 2.0, %v210_v46  ;;  %v297_v57 = vmul.f32 2.0, %v250_v47 }
 0x11a   :  { %v1004_v49 = vsub.f32 %v298_v45, %v552_v43  ;;  %v313_v50 = vsub.f32 %v290_v44, %v552_v43 }
 0x11b   :  { %v622_v51 = vpop.f32.mrb[2].mxu0  ;;  %v634_v52 = vpop.f32.mrb[2].mxu1  ;;  %v312_v58 = vsub.f32 %v289_v48, %v552_v43  ;;  %v320_v3 = vsub.f32 %v297_v57, %v552_v43 }
 0x11c   :  { %v292_v53 = vmul.f32 2.0, %v622_v51  ;;  %346 = vmax.xlane.f32.xlu1 %v1004_v49  ;;  %330 = vmax.xlane.f32.xlu0 %v313_v50  ;;  %v220_v54 = vpop.f32.mrb[3].mxu0  ;;  %v300_v55 = vmul.f32 2.0, %v634_v52  ;;  %v260_v56 = vpop.f32.mrb[3].mxu1 }
 0x11d   :  { %v291_v1 = vmul.f32 2.0, %v220_v54  ;;  %v299_v2 = vmul.f32 2.0, %v260_v56 }
 0x11e   :  { %v1007_v59 = vsub.f32 %v292_v53, %v552_v43  ;;  %v1010_v62 = vsub.f32 %v300_v55, %v552_v43 }
 0x11f   :  { %v625_v60 = vpop.f32.mrb[4].mxu0  ;;  %v637_v61 = vpop.f32.mrb[4].mxu1  ;;  %v322_v10 = vsub.f32 %v299_v2, %v552_v43  ;;  %v314_v11 = vsub.f32 %v291_v1, %v552_v43 }
 0x120   :  { %328 = vmax.xlane.f32.xlu0 %v312_v58  ;;  %334 = vmax.xlane.f32.xlu1 %v1007_v59  ;;  %v230_v63 = vpop.f32.mrb[5].mxu0  ;;  %v270_v0 = vpop.f32.mrb[5].mxu1  ;;  %v294_v6 = vmul.f32 2.0, %v625_v60  ;;  %v302_v12 = vmul.f32 2.0, %v637_v61 }
 0x121   :  { %v293_v7 = vmul.f32 2.0, %v230_v63  ;;  %v301_v13 = vmul.f32 2.0, %v270_v0 }
 0x122   :  { %v317_v14 = vsub.f32 %v294_v6, %v552_v43  ;;  %v1016_v18 = vsub.f32 %v302_v12, %v552_v43 }
 0x123   :  { %v628_v4 = vpop.f32.mrb[6].mxu0  ;;  %v640_v5 = vpop.f32.mrb[6].mxu1  ;;  %v1013_v15 = vsub.f32 %v293_v7, %v552_v43  ;;  %v1018_v19 = vsub.f32 %v301_v13, %v552_v43 }
 0x124   :  { %344 = vmax.xlane.f32.xlu0 %v320_v3  ;;  %350 = vmax.xlane.f32.xlu1 %v1010_v62  ;;  %v240_v8 = vpop.f32.mrb[7].mxu0  ;;  %v280_v9 = vpop.f32.mrb[7].mxu1  ;;  %v296_v16 = vmul.f32 2.0, %v628_v4  ;;  %v304_v20 = vmul.f32 2.0, %v640_v5 }
 0x125   :  { %v295_v17 = vmul.f32 2.0, %v240_v8  ;;  %v303_v21 = vmul.f32 2.0, %v280_v9 }
 0x126   :  { %v1022_v22 = vsub.f32 %v296_v16, %v552_v43  ;;  %v1028_v24 = vsub.f32 %v304_v20, %v552_v43 }
 0x127   :  { %v1024_v23 = vsub.f32 %v295_v17, %v552_v43  ;;  %v1030_v25 = vsub.f32 %v303_v21, %v552_v43 }
 0x128   :  { %348 = vmax.xlane.f32.xlu0 %v322_v10  ;;  %332 = vmax.xlane.f32.xlu1 %v314_v11 }
 0x12c   :  { %338 = vmax.xlane.f32.xlu1 %v317_v14  ;;  %336 = vmax.xlane.f32.xlu0 %v1013_v15 }
 0x130   :  { %354 = vmax.xlane.f32.xlu1 %v1016_v18  ;;  %352 = vmax.xlane.f32.xlu0 %v1018_v19 }
 0x134   :  { %342 = vmax.xlane.f32.xlu1 %v1022_v22  ;;  %340 = vmax.xlane.f32.xlu0 %v1024_v23 }
 0x138   :  { %358 = vmax.xlane.f32.xlu1 %v1028_v24  ;;  %356 = vmax.xlane.f32.xlu0 %v1030_v25 }
 0x1a9   :  { %v347_v26 = vpop.xlane.xlu1 %346  ;;  %v331_v27 = vpop.xlane.xlu0 %330 }
 0x1aa   :  { %v361_v28 = vsub.f32 %v313_v50, %v331_v27  ;;  %v369_v29 = vsub.f32 %v1004_v49, %v347_v26 }
 0x1ac   :  { %v378_v30 = vmul.f32 1.442695, %v361_v28  ;;  %v394_v34 = vmul.f32 1.442695, %v369_v29 }
 0x1ad   :  { %v329_v31 = vpop.xlane.xlu0 %328  ;;  %v335_v32 = vpop.xlane.xlu1 %334 }
 0x1ae   :  { %v360_v33 = vsub.f32 %v312_v58, %v329_v31  ;;  %708 = vpow2.f32 %v378_v30  ;;  %v363_v35 = vsub.f32 %v1007_v59, %v335_v32 }
 0x1b0   :  { %v376_v36 = vmul.f32 1.442695, %v360_v33  ;;  %v382_v41 = vmul.f32 1.442695, %v363_v35 }
 0x1b1   :  { %v345_v37 = vpop.xlane.xlu0 %344  ;;  %v351_v38 = vpop.xlane.xlu1 %350 }
 0x1b2   :  { %710 = vpow2.f32 %v376_v36  ;;  %v368_v39 = vsub.f32 %v320_v3, %v345_v37  ;;  %v371_v40 = vsub.f32 %v1010_v62, %v351_v38 }
 0x1b3   :  { %712 = vpow2.f32 %v394_v34 }
 0x1b4   :  { %v392_v42 = vmul.f32 1.442695, %v368_v39  ;;  %v398_v45 = vmul.f32 1.442695, %v371_v40 }
 0x1b5   :  { %v349_v43 = vpop.xlane.xlu0 %348  ;;  %v333_v44 = vpop.xlane.xlu1 %332 }
 0x1b6   :  { %714 = vpow2.f32 %v392_v42  ;;  %v362_v46 = vsub.f32 %v314_v11, %v333_v44  ;;  %v370_v47 = vsub.f32 %v322_v10, %v349_v43 }
 0x1b7   :  { %716 = vpow2.f32 %v382_v41 }
 0x1b8   :  { %v380_v48 = vmul.f32 1.442695, %v362_v46  ;;  %v1037_v49 = vpop.eup %708  ;;  %718 = vpow2.f32 %v398_v45  ;;  %v396_v53 = vmul.f32 1.442695, %v370_v47 }
 0x1b9   :  { %v339_v50 = vpop.xlane.xlu1 %338  ;;  %v337_v51 = vpop.xlane.xlu0 %336  ;;  %410 = vadd.xlane.f32.xlu1 %v1037_v49 }
 0x1ba   :  { %v365_v52 = vsub.f32 %v317_v14, %v339_v50  ;;  %720 = vpow2.f32 %v380_v48  ;;  %v364_v54 = vsub.f32 %v1013_v15, %v337_v51 }
 0x1bc   :  { %v1041_v55 = vpop.eup %710  ;;  %v386_v56 = vmul.f32 1.442695, %v365_v52  ;;  %v384_v61 = vmul.f32 1.442695, %v364_v54 }
 0x1bd   :  { %v1043_v57 = vpop.eup %712  ;;  %v355_v58 = vpop.xlane.xlu1 %354  ;;  %408 = vadd.xlane.f32.xlu0 %v1041_v55 }
 0x1be   :  { %v353_v59 = vpop.xlane.xlu0 %352  ;;  %722 = vpow2.f32 %v386_v56  ;;  %v373_v60 = vsub.f32 %v1016_v18, %v355_v58  ;;  %426 = vadd.xlane.f32.xlu1 %v1043_v57 }
 0x1bf   :  { %724 = vpow2.f32 %v396_v53  ;;  %v372_v62 = vsub.f32 %v1018_v19, %v353_v59 }
 0x1c0   :  { %v1049_v63 = vpop.eup %714  ;;  %v402_v0 = vmul.f32 1.442695, %v373_v60 }
 0x1c1   :  { %v1051_v1 = vpop.eup %716  ;;  %v343_v2 = vpop.xlane.xlu1 %342  ;;  %424 = vadd.xlane.f32.xlu0 %v1049_v63  ;;  %v400_v5 = vmul.f32 1.442695, %v372_v62 }
 0x1c2   :  { %v341_v3 = vpop.xlane.xlu0 %340  ;;  %726 = vpow2.f32 %v402_v0  ;;  %414 = vadd.xlane.f32.xlu1 %v1051_v1  ;;  %v367_v4 = vsub.f32 %v1022_v22, %v343_v2  ;;  %v1057_v7 = vpop.eup %718 }
 0x1c3   :  { %728 = vpow2.f32 %v384_v61  ;;  %v366_v6 = vsub.f32 %v1024_v23, %v341_v3 }
 0x1c4   :  { %v390_v8 = vmul.f32 1.442695, %v367_v4  ;;  %v1059_v9 = vpop.eup %720 }
 0x1c5   :  { %v359_v10 = vpop.xlane.xlu1 %358  ;;  %412 = vadd.xlane.f32.xlu0 %v1059_v9  ;;  %v388_v13 = vmul.f32 1.442695, %v366_v6 }
 0x1c6   :  { %v357_v11 = vpop.xlane.xlu0 %356  ;;  %730 = vpow2.f32 %v390_v8  ;;  %430 = vadd.xlane.f32.xlu1 %v1057_v7  ;;  %v375_v12 = vsub.f32 %v1028_v24, %v359_v10 }
 0x1c7   :  { %732 = vpow2.f32 %v400_v5  ;;  %v374_v14 = vsub.f32 %v1030_v25, %v357_v11 }
 0x1c8   :  { %v1065_v15 = vpop.eup %722  ;;  %v406_v16 = vmul.f32 1.442695, %v375_v12 }
 0x1c9   :  { %v1067_v17 = vpop.eup %724  ;;  %v404_v18 = vmul.f32 1.442695, %v374_v14 }
 0x1ca   :  { %734 = vpow2.f32 %v406_v16  ;;  %418 = vadd.xlane.f32.xlu1 %v1065_v15  ;;  %428 = vadd.xlane.f32.xlu0 %v1067_v17 }
 0x1cb   :  { %736 = vpow2.f32 %v388_v13 }
 0x1cc   :  { %v1071_v19 = vpop.eup %726  ;;  %738 = vpow2.f32 %v404_v18 }
 0x1cd   :  { %v1073_v20 = vpop.eup %728 }
 0x1ce   :  { %434 = vadd.xlane.f32.xlu1 %v1071_v19  ;;  %416 = vadd.xlane.f32.xlu0 %v1073_v20 }
 0x1d0   :  { %v1077_v21 = vpop.eup %730 }
 0x1d1   :  { %v1079_v22 = vpop.eup %732 }
 0x1d2   :  { %422 = vadd.xlane.f32.xlu1 %v1077_v21  ;;  %432 = vadd.xlane.f32.xlu0 %v1079_v22 }
 0x1d4   :  { %v1083_v23 = vpop.eup %734 }
 0x1d5   :  { %v1085_v24 = vpop.eup %736 }
 0x1d6   :  { %438 = vadd.xlane.f32.xlu1 %v1083_v23  ;;  %420 = vadd.xlane.f32.xlu0 %v1085_v24  ;;  %v1089_v25 = vpop.eup %738 }
 0x1da   :  { %436 = vadd.xlane.f32.xlu0 %v1089_v25 }
 0x246   :  { %v411_v26 = vpop.xlane.xlu1 %410 }
 0x247   :  { %740 = vrcp.f32 %v411_v26 }
 0x24a   :  { %v409_v27 = vpop.xlane.xlu0 %408 }
 0x24b   :  { %v427_v28 = vpop.xlane.xlu1 %426  ;;  %742 = vrcp.f32 %v409_v27 }
 0x24c   :  { %744 = vrcp.f32 %v427_v28 }
 0x24e   :  { %v425_v29 = vpop.xlane.xlu0 %424 }
 0x24f   :  { %v415_v30 = vpop.xlane.xlu1 %414  ;;  %746 = vrcp.f32 %v425_v29 }
 0x250   :  { %748 = vrcp.f32 %v415_v30 }
 0x251   :  { %v741_v31 = vpop.eup %740 }
 0x252   :  { %v457_v32 = vmul.f32 %v741_v31, %v1037_v49  ;;  %v413_v34 = vpop.xlane.xlu0 %412 }
 0x253   :  { %v431_v33 = vpop.xlane.xlu1 %430 }
 0x254   :  { %750 = vrcp.f32 %v431_v33  ;;  %v473_v36 = vadd.f32 1e-10, %v457_v32 }
 0x255   :  { %v743_v35 = vpop.eup %742  ;;  %752 = vrcp.f32 %v413_v34 }
 0x256   :  { %v745_v37 = vpop.eup %744  ;;  %v456_v38 = vmul.f32 %v743_v35, %v1041_v55  ;;  %489 = vst [vmem:[#allocation2 + $0x8] sm:$0xff] %v473_v36 }
 0x257   :  { %v465_v39 = vmul.f32 %v745_v37, %v1043_v57  ;;  %v419_v40 = vpop.xlane.xlu1 %418  ;;  %v429_v41 = vpop.xlane.xlu0 %428 }
 0x258   :  { %v472_v42 = vadd.f32 1e-10, %v456_v38  ;;  %754 = vrcp.f32 %v419_v40 }
 0x259   :  { %v747_v43 = vpop.eup %746  ;;  %v481_v44 = vadd.f32 1e-10, %v465_v39  ;;  %756 = vrcp.f32 %v429_v41 }
 0x25a   :  { %v749_v45 = vpop.eup %748  ;;  %488 = vst [vmem:[#allocation2] sm:$0xff] %v472_v42  ;;  %v464_v46 = vmul.f32 %v747_v43, %v1049_v63 }
 0x25b   :  { %497 = vst [vmem:[#allocation2 + $0x48] sm:$0xff] %v481_v44  ;;  %v459_v47 = vmul.f32 %v749_v45, %v1051_v1  ;;  %v435_v48 = vpop.xlane.xlu1 %434  ;;  %v417_v49 = vpop.xlane.xlu0 %416 }
 0x25c   :  { %v480_v50 = vadd.f32 1e-10, %v464_v46  ;;  %758 = vrcp.f32 %v435_v48 }
 0x25d   :  { %v475_v51 = vadd.f32 1e-10, %v459_v47  ;;  %760 = vrcp.f32 %v417_v49 }
 0x25e   :  { %v751_v52 = vpop.eup %750  ;;  %496 = vst [vmem:[#allocation2 + $0x40] sm:$0xff] %v480_v50 }
 0x25f   :  { %v753_v53 = vpop.eup %752  ;;  %491 = vst [vmem:[#allocation2 + $0x18] sm:$0xff] %v475_v51  ;;  %v467_v54 = vmul.f32 %v751_v52, %v1057_v7  ;;  %v423_v55 = vpop.xlane.xlu1 %422 }
 0x260   :  { %v433_v56 = vpop.xlane.xlu0 %432  ;;  %v458_v57 = vmul.f32 %v753_v53, %v1059_v9  ;;  %762 = vrcp.f32 %v423_v55 }
 0x261   :  { %v483_v58 = vadd.f32 1e-10, %v467_v54  ;;  %764 = vrcp.f32 %v433_v56 }
 0x262   :  { %v755_v59 = vpop.eup %754  ;;  %v474_v60 = vadd.f32 1e-10, %v458_v57 }
 0x263   :  { %v757_v61 = vpop.eup %756  ;;  %499 = vst [vmem:[#allocation2 + $0x58] sm:$0xff] %v483_v58  ;;  %v461_v62 = vmul.f32 %v755_v59, %v1065_v15  ;;  %v439_v63 = vpop.xlane.xlu1 %438 }
 0x264   :  { %v421_v0 = vpop.xlane.xlu0 %420  ;;  %490 = vst [vmem:[#allocation2 + $0x10] sm:$0xff] %v474_v60  ;;  %v466_v1 = vmul.f32 %v757_v61, %v1067_v17  ;;  %766 = vrcp.f32 %v439_v63 }
 0x265   :  { %v477_v2 = vadd.f32 1e-10, %v461_v62  ;;  %768 = vrcp.f32 %v421_v0 }
 0x266   :  { %v759_v3 = vpop.eup %758  ;;  %v482_v4 = vadd.f32 1e-10, %v466_v1 }
 0x267   :  { %v761_v5 = vpop.eup %760  ;;  %493 = vst [vmem:[#allocation2 + $0x28] sm:$0xff] %v477_v2  ;;  %v469_v6 = vmul.f32 %v759_v3, %v1071_v19 }
 0x268   :  { %v437_v7 = vpop.xlane.xlu0 %436  ;;  %498 = vst [vmem:[#allocation2 + $0x50] sm:$0xff] %v482_v4  ;;  %v460_v8 = vmul.f32 %v761_v5, %v1073_v20 }
 0x269   :  { %770 = vrcp.f32 %v437_v7  ;;  %v485_v9 = vadd.f32 1e-10, %v469_v6 }
 0x26a   :  { %v763_v10 = vpop.eup %762  ;;  %v476_v11 = vadd.f32 1e-10, %v460_v8 }
 0x26b   :  { %v765_v12 = vpop.eup %764  ;;  %501 = vst [vmem:[#allocation2 + $0x68] sm:$0xff] %v485_v9  ;;  %v463_v13 = vmul.f32 %v763_v10, %v1077_v21 }
 0x26c   :  { %492 = vst [vmem:[#allocation2 + $0x20] sm:$0xff] %v476_v11  ;;  %v468_v14 = vmul.f32 %v765_v12, %v1079_v22 }
 0x26d   :  { %v479_v15 = vadd.f32 1e-10, %v463_v13 }
 0x26e   :  { %v767_v16 = vpop.eup %766  ;;  %v484_v17 = vadd.f32 1e-10, %v468_v14 }
 0x26f   :  { %v769_v18 = vpop.eup %768  ;;  %495 = vst [vmem:[#allocation2 + $0x38] sm:$0xff] %v479_v15  ;;  %v471_v19 = vmul.f32 %v767_v16, %v1083_v23 }
 0x270   :  { %500 = vst [vmem:[#allocation2 + $0x60] sm:$0xff] %v484_v17  ;;  %v462_v20 = vmul.f32 %v769_v18, %v1085_v24 }
 0x271   :  { %v487_v26 = vadd.f32 1e-10, %v471_v19 }
 0x272   :  { %v478_v28 = vadd.f32 1e-10, %v462_v20 }
 0x273   :  { %v771_v27 = vpop.eup %770  ;;  %503 = vst [vmem:[#allocation2 + $0x78] sm:$0xff] %v487_v26 }
 0x274   :  { %v470_v21 = vmul.f32 %v771_v27, %v1089_v25  ;;  %494 = vst [vmem:[#allocation2 + $0x30] sm:$0xff] %v478_v28 }
 0x276   :  { %v486_v22 = vadd.f32 1e-10, %v470_v21 }
 0x278   :  { %502 = vst [vmem:[#allocation2 + $0x70] sm:$0xff] %v486_v22 }
 0x279   :  { %783 = shalt.err (!%p780_p4)
}
 0x27a   :  { %s784_s25 = scalar_lea.hbm %s1123_s3, 2048 }
 0x27b   :  { %p785_p5 = scmp.ne.s32.totalorder %s1123_s3, %s784_s25  ;;  %p788_p6 = scmp.lt.u32.totalorder %s784_s25, %s1123_s3 }
 0x27d   :  { %p790_p7 = pnand %p788_p6, %p785_p5 }
 0x27f   :  { %793 = shalt.err (!%p790_p7)
}
 0x280   :  { %s797_s30 = smov 128   ;;  %s798_s4 = smov 8  }
 0x281   :  { %515 = dma.vmem_to_hbm [thread:$0]  %s510_s2, 2048, %s1123_s3, [#allocation3], %s797_s30, %s797_s30, %s798_s4  }
 0x282   :  { %794 = dma.done.wait [#allocation3], 2048  }
 0x283   :  { %795 = vsyncadd [#allocation3], 4294965248 }
 0x284   :  { %519 = vsyncpa [#allocation3], 1 }

</bundles_post_ra>
